<compile_context>
chip_gen: v7x
topology: tpu7x:2x2x1
jax: 0.10.0
libtpu: 0.0.40
codegen_flags: <defaults>
</compile_context>

<pallas_src>
import jax
import jax.numpy as jnp
from jax.experimental import pallas as pl
from jax.experimental.pallas import tpu as pltpu


def _round_up(x: int, m: int) -> int:
    return (x + m - 1) // m * m


# ----------------------------- Pallas kernel --------------------------------
def _embed_onehot_kernel(idx_ref, tbl_ref, out_ref):
    # idx_ref: (1, T)         int32  token ids for this tile (lane-dense)
    # tbl_ref: (V_pad, E_pad) f32    full padded embedding table, VMEM-resident
    # out_ref: (T, E_pad)     f32    gathered embedding rows for this tile
    v_pad = tbl_ref.shape[0]
    t = idx_ref.shape[1]
    idx = idx_ref[...]                                           # (1, T)
    row_iota = jax.lax.broadcasted_iota(jnp.int32, (v_pad, t), 0)
    onehot = (row_iota == idx).astype(tbl_ref.dtype)             # (V_pad, T)
    # out[t, e] = sum_v onehot[v, t] * table[v, e]  (MXU, transposed-lhs dot)
    out_ref[...] = jax.lax.dot_general(
        onehot,
        tbl_ref[...],
        dimension_numbers=(((0,), (0,)), ((), ())),
        preferred_element_type=jnp.float32,
        precision=jax.lax.Precision.HIGHEST,   # exact f32 row copy
    ).astype(out_ref.dtype)


@jax.jit
def embedding_lookup(indices: jax.Array, table: jax.Array) -> jax.Array:
    """nn.Embedding-equivalent gather done with a Pallas TPU kernel.

    indices: (batch, seq) integer array
    table:   (vocab, embed_dim) float array
    returns: (batch, seq, embed_dim)
    """
    batch, seq = indices.shape
    vocab, embed_dim = table.shape
    n = batch * seq

    # Tile sizes: many tokens per step, lane-dense (padded) output.
    tile_t = min(512, _round_up(n, 128))
    n_pad = _round_up(n, tile_t)
    num_tiles = n_pad // tile_t
    e_pad = _round_up(embed_dim, 128)   # lane-dense output stores
    v_pad = _round_up(vocab, 8)         # sublane-aligned table / one-hot

    flat_idx = indices.reshape(-1).astype(jnp.int32)
    flat_idx = jnp.pad(flat_idx, (0, n_pad - n)).reshape(num_tiles, tile_t)
    tbl = jnp.pad(table, ((0, v_pad - vocab), (0, e_pad - embed_dim)))

    # TODO(synk): for production vocab sizes where the padded table no longer
    # fits comfortably in VMEM (esp. v7x's 64 MiB), tile the vocab axis and
    # accumulate partial one-hot matmuls instead of keeping it fully resident.
    out = pl.pallas_call(
        _embed_onehot_kernel,
        out_shape=jax.ShapeDtypeStruct((n_pad, e_pad), table.dtype),
        grid=(num_tiles,),
        in_specs=[
            pl.BlockSpec((1, tile_t), lambda i: (i, 0)),      # token-id tile
            pl.BlockSpec((v_pad, e_pad), lambda i: (0, 0)),   # table, resident
        ],
        out_specs=pl.BlockSpec((tile_t, e_pad), lambda i: (i, 0)),
        compiler_params=pltpu.CompilerParams(
            dimension_semantics=("parallel",)),
    )(flat_idx, tbl)

    return out[:n, :embed_dim].reshape(batch, seq, embed_dim)


# --------------------------- Module-like wrappers ----------------------------
class Embedder1:
    """JAX/Pallas port of Embedder1: owns the embedding table, forward = lookup."""

    def __init__(self, vocab_size: int, embed_dim: int, key: jax.Array):
        # nn.Embedding default init: weight ~ N(0, 1)
        self.weight = jax.random.normal(key, (vocab_size, embed_dim), jnp.float32)

    def __call__(self, inputs: jax.Array) -> jax.Array:
        return embedding_lookup(inputs, self.weight)


class PosModel:
    """JAX/Pallas port of PosModel: wraps Embedder1."""

    def __init__(self, vocab_size: int, embed_dim: int, key: jax.Array):
        self.embedder = Embedder1(vocab_size, embed_dim, key)

    def forward(self, *inputs):
        # TODO(synk): PosModel.forward raises NotImplementedError in the
        # reference PyTorch code; only the embedder path is implementable.
        raise NotImplementedError

    def embed(self, inputs: jax.Array) -> jax.Array:
        return self.embedder(inputs)


# --------------------------------- main --------------------------------------
if __name__ == "__main__":
    key = jax.random.PRNGKey(0)
    k_tbl, k_idx = jax.random.split(key)

    vocab_size = 32      # len(rsc.vocab_in)
    embed_dim = 32       # cfg.embed_dim
    batch, seq = 2, 8    # "contexts of batch size"

    model = PosModel(vocab_size, embed_dim, k_tbl)
    indices = jax.random.randint(k_idx, (batch, seq), 0, vocab_size, jnp.int32)

    out = model.embed(indices)
    out = jax.block_until_ready(out)

    # Correctness check against plain-JAX embedding gather.
    ref = jnp.take(model.embedder.weight, indices, axis=0)
    assert out.shape == (batch, seq, embed_dim)
    assert jnp.allclose(out, ref, atol=1e-5, rtol=1e-5), \
        "Pallas embedding lookup mismatch"

    print("KERNEL_OK")
</pallas_src>

<mosaic_0001>
module attributes {stable_mosaic.version = 11 : i64} {
  func.func @_embed_onehot_kernel(%arg0: i32, %arg1: memref<1x128xi32, #tpu.memory_space<vmem>>, %arg2: memref<32x128xf32, #tpu.memory_space<vmem>>, %arg3: memref<128x128xf32, #tpu.memory_space<vmem>>) attributes {dimension_semantics = [#tpu.dimension_semantics<parallel>], iteration_bounds = array<i64: 1>, scalar_prefetch = 0 : i64, scratch_operands = 0 : i64, tpu.core_type = #tpu.core_type<tc>, window_params = [{transform_indices = @transform_0, window_bounds = array<i64: 1, 128>}, {pipeline_mode = #tpu.pipeline_mode<synchronous>, transform_indices = @transform_1, window_bounds = array<i64: 32, 128>}, {transform_indices = @transform_2, window_bounds = array<i64: 128, 128>}]} {
    %c0 = arith.constant 0 : index
    %c0_0 = arith.constant 0 : index
    %0 = vector.load %arg1[%c0, %c0_0] : memref<1x128xi32, #tpu.memory_space<vmem>>, vector<1x128xi32>
    %1 = tpu.iota {dimensions = array<i32: 0>} : vector<32x128xi32>
    %2 = vector.broadcast %0 : vector<1x128xi32> to vector<32x128xi32>
    %3 = arith.cmpi eq, %1, %2 : vector<32x128xi32>
    %4 = arith.extui %3 : vector<32x128xi1> to vector<32x128xi32>
    %5 = arith.sitofp %4 : vector<32x128xi32> to vector<32x128xf32>
    %c0_1 = arith.constant 0 : index
    %c0_2 = arith.constant 0 : index
    %6 = vector.load %arg2[%c0_1, %c0_2] : memref<32x128xf32, #tpu.memory_space<vmem>>, vector<32x128xf32>
    %cst = arith.constant dense<0.000000e+00> : vector<128x128xf32>
    %7 = tpu.matmul %5, %6, %cst {dimension_numbers = #tpu.dot_dimension_numbers<[0], [0], [1], [1], [0, 1, 1, 1], [], []>, precision = #tpu.contract_precision<fp32>} : vector<32x128xf32>, vector<32x128xf32>, vector<128x128xf32> -> vector<128x128xf32>
    %c0_3 = arith.constant 0 : index
    %c0_4 = arith.constant 0 : index
    %8 = vector.load %arg3[%c0_3, %c0_4] : memref<128x128xf32, #tpu.memory_space<vmem>>, vector<128x128xf32>
    tpu.vector_store %arg3[%c0_3, %c0_4], %7 {strides = array<i32>} : memref<128x128xf32, #tpu.memory_space<vmem>>, vector<128x128xf32>,
    return
  }
  func.func @transform_0(%arg0: i32) -> (i32, i32) {
    %c0_i32 = arith.constant 0 : i32
    %c0_i32_0 = arith.constant 0 : i32
    return %arg0, %c0_i32 : i32, i32
  }
  func.func @transform_1(%arg0: i32) -> (i32, i32) {
    %c0_i32 = arith.constant 0 : i32
    %c0_i32_0 = arith.constant 0 : i32
    %c0_i32_1 = arith.constant 0 : i32
    return %c0_i32, %c0_i32_0 : i32, i32
  }
  func.func @transform_2(%arg0: i32) -> (i32, i32) {
    %c0_i32 = arith.constant 0 : i32
    %c0_i32_0 = arith.constant 0 : i32
    return %arg0, %c0_i32 : i32, i32
  }
}

</mosaic_0001>

<bundles_post_ra>
// kernel: embedding_lookup.1
= control target key start
LH: loop header
LB: loop body
LE: loop exit
PB: predicated region body
PF: predicated region fallthrough
CT: control target
= control target key end

     0   :  { %v12_v0 = vlaneseq  ;;  %v1714_v5 = vmov 0.0   ;;  %vm69_vm4 = vcmask 261120   ;;  %s2009_s0 = inlined_call_operand.vmem [shape: s32[1,128], index: 0, kind: input, shape index: {}]   ;;  %s2010_s1 = inlined_call_operand.vmem [shape: f32[32,128], index: 1, kind: input, shape index: {}]   ;;  %s2011_s2 = inlined_call_operand.vmem [shape: f32[128,128], index: 2, kind: output, shape index: {}]  }
   0x1   :  { %v1268_v1 = vld [vmem:[%s2009_s0] ss:$0 sm:$0xff]  ;;  %v34_v8 = vld [vmem:[%s2010_s1 + $0x8] sm:$0xff]  ;;  %v35_v14 = vld [vmem:[%s2010_s1 + $0x10] sm:$0xff] }
   0x2   :  { %v13_v2 = vshrl.u32 %v12_v0, 7  ;;  %v33_v7 = vld [vmem:[%s2010_s1] sm:$0xff]  ;;  %v122_v11 = vand.u32 4294901760, %v34_v8  ;;  %v36_v15 = vld [vmem:[%s2010_s1 + $0x18] sm:$0xff]  ;;  %v125_v16 = vand.u32 4294901760, %v35_v14 }
   0x3   :  { %v119_v9 = vand.u32 4294901760, %v33_v7  ;;  %v128_v17 = vand.u32 4294901760, %v36_v15 }
   0x4   :  { %vm21_vm0 = vcmp.eq.s32.totalorder %v13_v2, %v1268_v1  ;;  %v14_v3 = vadd.s32 8, %v13_v2  ;;  %v15_v4 = vadd.s32 16, %v13_v2  ;;  %v16_v12 = vadd.s32 24, %v13_v2 }
   0x5   :  { %v1269_v6 = vsel %vm21_vm0, 1.0, %v1714_v5  ;;  %v1739_v13 = vpack.c.bf16 %v122_v11, %v119_v9  ;;  %v1750_v19 = vpack.c.bf16 %v128_v17, %v125_v16  ;;  %v349_v21 = vsub.f32 %v33_v7, %v119_v9 }
   0x6   :  { %37 = vxpose.xlu0.b32.start [1/4] (short) %v1269_v6, 128  ;;  %vm22_vm1 = vcmp.eq.s32.totalorder %v14_v3, %v1268_v1  ;;  %vm23_vm2 = vcmp.eq.s32.totalorder %v15_v4, %v1268_v1  ;;  %vm24_vm3 = vcmp.eq.s32.totalorder %v16_v12, %v1268_v1  ;;  %v356_v22 = vsub.f32 %v34_v8, %v122_v11 }
   0x7   :  { %v1270_v10 = vsel %vm22_vm1, 1.0, %v1714_v5  ;;  %v1271_v18 = vsel %vm23_vm2, 1.0, %v1714_v5  ;;  %1610 = vmatprep.subr.bf16.mxu0 %v1739_v13  ;;  %1586 = vmatprep.subr.bf16.mxu1 %v1739_v13  ;;  %v1272_v20 = vsel %vm24_vm3, 1.0, %v1714_v5  ;;  %v350_v23 = vand.u32 4294901760, %v349_v21 }
   0x8   :  { %1612 = vmatpush3.bf16.msra.mxu0 %v1739_v13  ;;  %1588 = vmatpush3.bf16.msra.mxu1 %v1739_v13  ;;  %v357_v24 = vand.u32 4294901760, %v356_v22  ;;  %v363_v31 = vsub.f32 %v35_v14, %v125_v16  ;;  %v370_v32 = vsub.f32 %v36_v15, %v128_v17  ;;  %v1757_v41 = vpack.c.bf16 %v356_v22, %v349_v21 }
   0x9   :  { %1614 = vmatprep.subr.bf16.mxu0 %v1750_v19  ;;  %1590 = vmatprep.subr.bf16.mxu1 %v1750_v19  ;;  %v351_v25 = vsub.f32 %v349_v21, %v350_v23 }
   0xa   :  { %38 = vxpose.xlu0.b32.cont [2/4] (short) %v1270_v10, 128  ;;  %v358_v26 = vsub.f32 %v356_v22, %v357_v24  ;;  %v1617_v27 = vpack.c.bf16 %v357_v24, %v350_v23  ;;  %v364_v33 = vand.u32 4294901760, %v363_v31  ;;  %v371_v34 = vand.u32 4294901760, %v370_v32 }
   0xb   :  { %v352_v28 = vand.u32 4294901760, %v351_v25  ;;  %v1759_v42 = vpack.c.bf16 %v370_v32, %v363_v31 }
   0xc   :  { %1616 = vmatpush3.bf16.msra.mxu0 %v1750_v19  ;;  %1592 = vmatpush3.bf16.msra.mxu1 %v1750_v19  ;;  %v359_v29 = vand.u32 4294901760, %v358_v26  ;;  %v365_v35 = vsub.f32 %v363_v31, %v364_v33  ;;  %v372_v36 = vsub.f32 %v370_v32, %v371_v34  ;;  %v1621_v37 = vpack.c.bf16 %v371_v34, %v364_v33 }
   0xd   :  { %1618 = vmatprep.subr.bf16.mxu0 %v1617_v27 }
   0xe   :  { %39 = vxpose.xlu0.b32.cont [3/4] (short) %v1271_v18, 128  ;;  %v1593_v30 = vpack.c.bf16 %v359_v29, %v352_v28  ;;  %v366_v38 = vand.u32 4294901760, %v365_v35  ;;  %v373_v39 = vand.u32 4294901760, %v372_v36 }
  0x10   :  { %1594 = vmatprep.subr.bf16.mxu1 %v1593_v30  ;;  %v1597_v40 = vpack.c.bf16 %v373_v39, %v366_v38 }
  0x12   :  { %40 = vxpose.xlu0.b32.end [4/4] (short) %v1272_v20, 128 }
  0x86   :  { %v53_v43 = vpop.trf.xlu0 }
  0x87   :  { %v71_v44 = vsel %vm69_vm4, %v53_v43, 0 }
  0x88   :  { %v1762_v45 = vand.u32 4294901760, %v71_v44 }
  0x8a   :  { %v1765_v46 = vsub.f32 %v71_v44, %v1762_v45  ;;  %v54_v47 = vpop.trf.xlu0 }
  0x8b   :  { %v74_v48 = vsel %vm69_vm4, %v54_v47, 0 }
  0x8c   :  { %v1768_v49 = vand.u32 4294901760, %v74_v48  ;;  %v189_v50 = vand.u32 4294901760, %v1765_v46 }
  0x8e   :  { %v1772_v51 = vsub.f32 %v74_v48, %v1768_v49  ;;  %1497 = vmatprep.mubr.f32.mxu0 %v189_v50  ;;  %v55_v52 = vpop.trf.xlu0  ;;  %v190_v53 = vsub.f32 %v1765_v46, %v189_v50 }
  0x8f   :  { %v77_v54 = vsel %vm69_vm4, %v55_v52, 0 }
  0x90   :  { %v1776_v55 = vand.u32 4294901760, %v77_v54  ;;  %v191_v56 = vand.u32 4294901760, %v190_v53  ;;  %v199_v57 = vand.u32 4294901760, %v1772_v51 }
  0x92   :  { %v1780_v58 = vsub.f32 %v77_v54, %v1776_v55  ;;  %1401 = vmatprep.mubr.f32.mxu1 %v191_v56  ;;  %1498 = vmatmul.mubr.f32.vlgmr.msra.gmra.mrb[0].mxu0 %v199_v57  ;;  %v56_v59 = vpop.trf.xlu0  ;;  %v200_v60 = vsub.f32 %v1772_v51, %v199_v57 }
  0x93   :  { %v80_v61 = vsel %vm69_vm4, %v56_v59, 0  ;;  %1620 = vmatpush3.bf16.msra.mxu0 %v1617_v27 }
  0x94   :  { %v1784_v62 = vand.u32 4294901760, %v80_v61  ;;  %v201_v63 = vand.u32 4294901760, %v200_v60  ;;  %v209_v0 = vand.u32 4294901760, %v1780_v58  ;;  %1622 = vmatprep.subr.bf16.mxu0 %v1621_v37 }
  0x96   :  { %v1788_v1 = vsub.f32 %v80_v61, %v1784_v62  ;;  %1402 = vmatmul.mubr.f32.vlgmr.msra.gmra.mrb[0].mxu1 %v201_v63  ;;  %1500 = vmatprep.mubr.f32.mxu0 %v209_v0  ;;  %v57_v2 = vpop.trf.xlu0  ;;  %v210_v3 = vsub.f32 %v1780_v58, %v209_v0 }
  0x97   :  { %v83_v4 = vsel %vm69_vm4, %v57_v2, 0  ;;  %1596 = vmatpush3.bf16.msra.mxu1 %v1593_v30  ;;  %1624 = vmatpush3.bf16.msra.mxu0 %v1621_v37 }
  0x98   :  { %v1792_v5 = vand.u32 4294901760, %v83_v4  ;;  %v211_v6 = vand.u32 4294901760, %v210_v3  ;;  %v219_v7 = vand.u32 4294901760, %v1788_v1  ;;  %1598 = vmatprep.subr.bf16.mxu1 %v1597_v40  ;;  %1626 = vmatprep.subr.bf16.mxu0 %v1739_v13 }
  0x9a   :  { %v1797_v8 = vsub.f32 %v83_v4, %v1792_v5  ;;  %1404 = vmatprep.mubr.f32.mxu1 %v211_v6  ;;  %1501 = vmatmul.mubr.f32.gmra.mrb[2].mxu0 %v219_v7  ;;  %v58_v9 = vpop.trf.xlu0  ;;  %v220_v10 = vsub.f32 %v1788_v1, %v219_v7 }
  0x9b   :  { %v86_v11 = vsel %vm69_vm4, %v58_v9, 0  ;;  %1600 = vmatpush3.bf16.msra.mxu1 %v1597_v40 }
  0x9c   :  { %v1801_v12 = vand.u32 4294901760, %v86_v11  ;;  %v221_v14 = vand.u32 4294901760, %v220_v10  ;;  %v229_v15 = vand.u32 4294901760, %v1797_v8  ;;  %1602 = vmatprep.subr.bf16.mxu1 %v1757_v41 }
  0x9e   :  { %v1806_v16 = vsub.f32 %v86_v11, %v1801_v12  ;;  %1405 = vmatmul.mubr.f32.gmra.mrb[2].mxu1 %v221_v14  ;;  %1503 = vmatprep.mubr.f32.mxu0 %v229_v15  ;;  %v59_v17 = vpop.trf.xlu0  ;;  %v230_v18 = vsub.f32 %v1797_v8, %v229_v15 }
  0x9f   :  { %v89_v20 = vsel %vm69_vm4, %v59_v17, 0 }
  0xa0   :  { %v1810_v21 = vand.u32 4294901760, %v89_v20  ;;  %v231_v22 = vand.u32 4294901760, %v230_v18  ;;  %v239_v23 = vand.u32 4294901760, %v1806_v16 }
  0xa2   :  { %v1814_v24 = vsub.f32 %v89_v20, %v1810_v21  ;;  %1407 = vmatprep.mubr.f32.mxu1 %v231_v22  ;;  %1504 = vmatmul.mubr.f32.gmra.mrb[4].mxu0 %v239_v23  ;;  %v60_v25 = vpop.trf.xlu0  ;;  %v240_v26 = vsub.f32 %v1806_v16, %v239_v23 }
  0xa3   :  { %v92_v27 = vsel %vm69_vm4, %v60_v25, 0 }
  0xa4   :  { %v1818_v28 = vand.u32 4294901760, %v92_v27  ;;  %v241_v29 = vand.u32 4294901760, %v240_v26  ;;  %v249_v30 = vand.u32 4294901760, %v1814_v24 }
  0xa6   :  { %v1822_v31 = vsub.f32 %v92_v27, %v1818_v28  ;;  %1408 = vmatmul.mubr.f32.gmra.mrb[4].mxu1 %v241_v29  ;;  %1506 = vmatprep.mubr.f32.mxu0 %v249_v30  ;;  %v61_v32 = vpop.trf.xlu0  ;;  %v250_v33 = vsub.f32 %v1814_v24, %v249_v30 }
  0xa7   :  { %v95_v34 = vsel %vm69_vm4, %v61_v32, 0 }
  0xa8   :  { %v1826_v35 = vand.u32 4294901760, %v95_v34  ;;  %v251_v36 = vand.u32 4294901760, %v250_v33  ;;  %v259_v37 = vand.u32 4294901760, %v1822_v31 }
  0xaa   :  { %v1830_v38 = vsub.f32 %v95_v34, %v1826_v35  ;;  %1410 = vmatprep.mubr.f32.mxu1 %v251_v36  ;;  %1507 = vmatmul.mubr.f32.gmra.mrb[6].mxu0 %v259_v37  ;;  %v62_v39 = vpop.trf.xlu0  ;;  %v260_v40 = vsub.f32 %v1822_v31, %v259_v37 }
  0xab   :  { %v98_v43 = vsel %vm69_vm4, %v62_v39, 0 }
  0xac   :  { %v1834_v44 = vand.u32 4294901760, %v98_v43  ;;  %v261_v47 = vand.u32 4294901760, %v260_v40  ;;  %v269_v48 = vand.u32 4294901760, %v1830_v38 }
  0xae   :  { %v1838_v50 = vsub.f32 %v98_v43, %v1834_v44  ;;  %1411 = vmatmul.mubr.f32.gmra.mrb[6].mxu1 %v261_v47  ;;  %1509 = vmatprep.mubr.f32.mxu0 %v269_v48  ;;  %v63_v52 = vpop.trf.xlu0  ;;  %v270_v53 = vsub.f32 %v1830_v38, %v269_v48 }
  0xaf   :  { %v101_v54 = vsel %vm69_vm4, %v63_v52, 0 }
  0xb0   :  { %v1842_v56 = vand.u32 4294901760, %v101_v54  ;;  %v271_v57 = vand.u32 4294901760, %v270_v53  ;;  %v279_v59 = vand.u32 4294901760, %v1838_v50 }
  0xb2   :  { %v1846_v60 = vsub.f32 %v101_v54, %v1842_v56  ;;  %1413 = vmatprep.mubr.f32.mxu1 %v271_v57  ;;  %1510 = vmatmul.mubr.f32.gmra.mrb[8].mxu0 %v279_v59  ;;  %v64_v61 = vpop.trf.xlu0  ;;  %v280_v63 = vsub.f32 %v1838_v50, %v279_v59 }
  0xb3   :  { %v104_v0 = vsel %vm69_vm4, %v64_v61, 0 }
  0xb4   :  { %v1850_v2 = vand.u32 4294901760, %v104_v0  ;;  %v281_v3 = vand.u32 4294901760, %v280_v63  ;;  %v289_v4 = vand.u32 4294901760, %v1846_v60 }
  0xb6   :  { %v1854_v6 = vsub.f32 %v104_v0, %v1850_v2  ;;  %1414 = vmatmul.mubr.f32.gmra.mrb[8].mxu1 %v281_v3  ;;  %1512 = vmatprep.mubr.f32.mxu0 %v289_v4  ;;  %v65_v7 = vpop.trf.xlu0  ;;  %v290_v9 = vsub.f32 %v1846_v60, %v289_v4 }
  0xb7   :  { %v107_v10 = vsel %vm69_vm4, %v65_v7, 0 }
  0xb8   :  { %v1858_v11 = vand.u32 4294901760, %v107_v10  ;;  %v291_v14 = vand.u32 4294901760, %v290_v9  ;;  %v299_v15 = vand.u32 4294901760, %v1854_v6 }
  0xba   :  { %v1862_v17 = vsub.f32 %v107_v10, %v1858_v11  ;;  %1416 = vmatprep.mubr.f32.mxu1 %v291_v14  ;;  %1513 = vmatmul.mubr.f32.gmra.mrb[10].mxu0 %v299_v15  ;;  %v66_v18 = vpop.trf.xlu0  ;;  %v300_v20 = vsub.f32 %v1854_v6, %v299_v15 }
  0xbb   :  { %v110_v22 = vsel %vm69_vm4, %v66_v18, 0 }
  0xbc   :  { %v1866_v23 = vand.u32 4294901760, %v110_v22  ;;  %v301_v25 = vand.u32 4294901760, %v300_v20  ;;  %v309_v26 = vand.u32 4294901760, %v1862_v17 }
  0xbe   :  { %v1870_v27 = vsub.f32 %v110_v22, %v1866_v23  ;;  %1417 = vmatmul.mubr.f32.gmra.mrb[10].mxu1 %v301_v25  ;;  %1515 = vmatprep.mubr.f32.mxu0 %v309_v26  ;;  %v67_v29 = vpop.trf.xlu0  ;;  %v310_v30 = vsub.f32 %v1862_v17, %v309_v26 }
  0xbf   :  { %v113_v32 = vsel %vm69_vm4, %v67_v29, 0 }
  0xc0   :  { %v1874_v33 = vand.u32 4294901760, %v113_v32  ;;  %v311_v34 = vand.u32 4294901760, %v310_v30  ;;  %v319_v36 = vand.u32 4294901760, %v1870_v27 }
  0xc2   :  { %v1878_v37 = vsub.f32 %v113_v32, %v1874_v33  ;;  %1419 = vmatprep.mubr.f32.mxu1 %v311_v34  ;;  %1516 = vmatmul.mubr.f32.gmra.mrb[12].mxu0 %v319_v36  ;;  %v68_v39 = vpop.trf.xlu0  ;;  %v320_v40 = vsub.f32 %v1870_v27, %v319_v36 }
  0xc3   :  { %v116_v43 = vsel %vm69_vm4, %v68_v39, 0 }
  0xc4   :  { %v1882_v47 = vand.u32 4294901760, %v116_v43  ;;  %v321_v48 = vand.u32 4294901760, %v320_v40  ;;  %v329_v52 = vand.u32 4294901760, %v1878_v37 }
  0xc6   :  { %v1886_v53 = vsub.f32 %v116_v43, %v1882_v47  ;;  %1420 = vmatmul.mubr.f32.gmra.mrb[12].mxu1 %v321_v48  ;;  %1518 = vmatprep.mubr.f32.mxu0 %v329_v52  ;;  %v330_v54 = vsub.f32 %v1878_v37, %v329_v52 }
  0xc8   :  { %v331_v57 = vand.u32 4294901760, %v330_v54  ;;  %v339_v59 = vand.u32 4294901760, %v1886_v53 }
  0xca   :  { %1422 = vmatprep.mubr.f32.mxu1 %v331_v57  ;;  %1519 = vmatmul.mubr.f32.gmra.mrb[14].mxu0 %v339_v59  ;;  %v340_v61 = vsub.f32 %v1886_v53, %v339_v59 }
  0xcb   :  { %1529 = vmatprep.mubr.f32.mxu0 %v1762_v45 }
  0xcc   :  { %v341_v63 = vand.u32 4294901760, %v340_v61 }
  0xce   :  { %1423 = vmatmul.mubr.f32.gmra.mrb[14].mxu1 %v341_v63  ;;  %1530 = vmatmul.mubr.f32.vlgmr.msra.gmra.mrb[0].mxu0 %v1768_v49 }
  0xcf   :  { %1433 = vmatprep.mubr.f32.mxu1 %v1762_v45  ;;  %1532 = vmatprep.mubr.f32.mxu0 %v1776_v55 }
  0xd0   :  { %1628 = vmatpush3.bf16.msra.mxu0 %v1739_v13 }
  0xd1   :  { %1630 = vmatprep.subr.bf16.mxu0 %v1750_v19 }
  0xd2   :  { %1434 = vmatmul.mubr.f32.vlgmr.msra.gmra.mrb[0].mxu1 %v1768_v49  ;;  %1533 = vmatmul.mubr.f32.gmra.mrb[2].mxu0 %v1784_v62 }
  0xd3   :  { %1604 = vmatpush3.bf16.msra.mxu1 %v1757_v41  ;;  %1436 = vmatprep.mubr.f32.mxu1 %v1776_v55 }
  0xd4   :  { %1535 = vmatprep.mubr.f32.mxu0 %v1792_v5  ;;  %1606 = vmatprep.subr.bf16.mxu1 %v1759_v42 }
  0xd5   :  { %1632 = vmatpush3.bf16.msra.mxu0 %v1750_v19 }
  0xd6   :  { %1437 = vmatmul.mubr.f32.gmra.mrb[2].mxu1 %v1784_v62  ;;  %1536 = vmatmul.mubr.f32.gmra.mrb[4].mxu0 %v1801_v12 }
  0xd7   :  { %1439 = vmatprep.mubr.f32.mxu1 %v1792_v5  ;;  %1538 = vmatprep.mubr.f32.mxu0 %v1810_v21 }
  0xd8   :  { %1608 = vmatpush3.bf16.msra.mxu1 %v1759_v42 }
  0xda   :  { %1440 = vmatmul.mubr.f32.gmra.mrb[4].mxu1 %v1801_v12  ;;  %1539 = vmatmul.mubr.f32.gmra.mrb[6].mxu0 %v1818_v28 }
  0xdb   :  { %1442 = vmatprep.mubr.f32.mxu1 %v1810_v21  ;;  %1541 = vmatprep.mubr.f32.mxu0 %v1826_v35 }
  0xde   :  { %1443 = vmatmul.mubr.f32.gmra.mrb[6].mxu1 %v1818_v28  ;;  %1542 = vmatmul.mubr.f32.gmra.mrb[8].mxu0 %v1834_v44 }
  0xdf   :  { %1445 = vmatprep.mubr.f32.mxu1 %v1826_v35  ;;  %1544 = vmatprep.mubr.f32.mxu0 %v1842_v56 }
  0xe2   :  { %1446 = vmatmul.mubr.f32.gmra.mrb[8].mxu1 %v1834_v44  ;;  %1545 = vmatmul.mubr.f32.gmra.mrb[10].mxu0 %v1850_v2 }
  0xe3   :  { %1448 = vmatprep.mubr.f32.mxu1 %v1842_v56  ;;  %1547 = vmatprep.mubr.f32.mxu0 %v1858_v11 }
  0xe6   :  { %1449 = vmatmul.mubr.f32.gmra.mrb[10].mxu1 %v1850_v2  ;;  %1548 = vmatmul.mubr.f32.gmra.mrb[12].mxu0 %v1866_v23 }
  0xe7   :  { %1451 = vmatprep.mubr.f32.mxu1 %v1858_v11  ;;  %1550 = vmatprep.mubr.f32.mxu0 %v1874_v33 }
  0xea   :  { %1452 = vmatmul.mubr.f32.gmra.mrb[12].mxu1 %v1866_v23  ;;  %1551 = vmatmul.mubr.f32.gmra.mrb[14].mxu0 %v1882_v47 }
  0xeb   :  { %1454 = vmatprep.mubr.f32.mxu1 %v1874_v33  ;;  %1561 = vmatprep.mubr.f32.mxu0 %v1762_v45 }
  0xee   :  { %1455 = vmatmul.mubr.f32.gmra.mrb[14].mxu1 %v1882_v47  ;;  %1562 = vmatmul.mubr.f32.vlgmr.msra.gmra.mrb[0].mxu0 %v1768_v49 }
  0xef   :  { %1465 = vmatprep.mubr.f32.mxu1 %v1765_v46  ;;  %1564 = vmatprep.mubr.f32.mxu0 %v1776_v55 }
  0xf2   :  { %1466 = vmatmul.mubr.f32.vlgmr.msra.gmra.mrb[0].mxu1 %v1772_v51  ;;  %1565 = vmatmul.mubr.f32.gmra.mrb[2].mxu0 %v1784_v62 }
  0xf3   :  { %1468 = vmatprep.mubr.f32.mxu1 %v1780_v58  ;;  %1567 = vmatprep.mubr.f32.mxu0 %v1792_v5 }
  0xf6   :  { %1469 = vmatmul.mubr.f32.gmra.mrb[2].mxu1 %v1788_v1  ;;  %1568 = vmatmul.mubr.f32.gmra.mrb[4].mxu0 %v1801_v12 }
  0xf7   :  { %1471 = vmatprep.mubr.f32.mxu1 %v1797_v8  ;;  %1570 = vmatprep.mubr.f32.mxu0 %v1810_v21 }
  0xfa   :  { %1472 = vmatmul.mubr.f32.gmra.mrb[4].mxu1 %v1806_v16  ;;  %1571 = vmatmul.mubr.f32.gmra.mrb[6].mxu0 %v1818_v28 }
  0xfb   :  { %1474 = vmatprep.mubr.f32.mxu1 %v1814_v24  ;;  %1573 = vmatprep.mubr.f32.mxu0 %v1826_v35 }
  0xfe   :  { %1475 = vmatmul.mubr.f32.gmra.mrb[6].mxu1 %v1822_v31  ;;  %1574 = vmatmul.mubr.f32.gmra.mrb[8].mxu0 %v1834_v44 }
  0xff   :  { %1477 = vmatprep.mubr.f32.mxu1 %v1830_v38  ;;  %1576 = vmatprep.mubr.f32.mxu0 %v1842_v56 }
 0x102   :  { %1478 = vmatmul.mubr.f32.gmra.mrb[8].mxu1 %v1838_v50  ;;  %1577 = vmatmul.mubr.f32.gmra.mrb[10].mxu0 %v1850_v2 }
 0x103   :  { %1480 = vmatprep.mubr.f32.mxu1 %v1846_v60  ;;  %1579 = vmatprep.mubr.f32.mxu0 %v1858_v11 }
 0x106   :  { %1481 = vmatmul.mubr.f32.gmra.mrb[10].mxu1 %v1854_v6  ;;  %1580 = vmatmul.mubr.f32.gmra.mrb[12].mxu0 %v1866_v23 }
 0x107   :  { %1483 = vmatprep.mubr.f32.mxu1 %v1862_v17  ;;  %1582 = vmatprep.mubr.f32.mxu0 %v1874_v33 }
 0x10a   :  { %1484 = vmatmul.mubr.f32.gmra.mrb[12].mxu1 %v1870_v27  ;;  %1583 = vmatmul.mubr.f32.gmra.mrb[14].mxu0 %v1882_v47 }
 0x10b   :  { %1486 = vmatprep.mubr.f32.mxu1 %v1878_v37 }
 0x10e   :  { %1487 = vmatmul.mubr.f32.gmra.mrb[14].mxu1 %v1886_v53 }
 0x1c1   :  { %v1563_v13 = vpop.f32.mrb[0].mxu0 }
 0x1c2   :  { %v1154_v19 = vpop.f32.mrb[1].mxu0 }
 0x1c5   :  { %v1467_v41 = vpop.f32.mrb[0].mxu1  ;;  %v1566_v42 = vpop.f32.mrb[2].mxu0 }
 0x1c6   :  { %v1633_v45 = vadd.f32 %v1563_v13, %v1467_v41  ;;  %v604_v46 = vpop.f32.mrb[1].mxu1  ;;  %v1166_v49 = vpop.f32.mrb[3].mxu0 }
 0x1c7   :  { %v1634_v51 = vadd.f32 %v1154_v19, %v604_v46 }
 0x1c8   :  { %1249 = vst [vmem:[%s2011_s2 + $0x8] sm:$0xff] %v1633_v45 }
 0x1c9   :  { %1248 = vst [vmem:[%s2011_s2] sm:$0xff] %v1634_v51  ;;  %v1470_v55 = vpop.f32.mrb[2].mxu1  ;;  %v1569_v58 = vpop.f32.mrb[4].mxu0 }
 0x1ca   :  { %v1635_v62 = vadd.f32 %v1566_v42, %v1470_v55  ;;  %v618_v1 = vpop.f32.mrb[3].mxu1  ;;  %v1178_v5 = vpop.f32.mrb[5].mxu0 }
 0x1cb   :  { %v1636_v8 = vadd.f32 %v1166_v49, %v618_v1 }
 0x1cc   :  { %1251 = vst [vmem:[%s2011_s2 + $0x18] sm:$0xff] %v1635_v62 }
 0x1cd   :  { %1250 = vst [vmem:[%s2011_s2 + $0x10] sm:$0xff] %v1636_v8  ;;  %v1473_v12 = vpop.f32.mrb[4].mxu1  ;;  %v1572_v16 = vpop.f32.mrb[6].mxu0 }
 0x1ce   :  { %v1637_v21 = vadd.f32 %v1569_v58, %v1473_v12  ;;  %v632_v24 = vpop.f32.mrb[5].mxu1  ;;  %v1190_v28 = vpop.f32.mrb[7].mxu0 }
 0x1cf   :  { %v1638_v31 = vadd.f32 %v1178_v5, %v632_v24 }
 0x1d0   :  { %1253 = vst [vmem:[%s2011_s2 + $0x28] sm:$0xff] %v1637_v21 }
 0x1d1   :  { %1252 = vst [vmem:[%s2011_s2 + $0x20] sm:$0xff] %v1638_v31  ;;  %v1476_v35 = vpop.f32.mrb[6].mxu1  ;;  %v1575_v38 = vpop.f32.mrb[8].mxu0 }
 0x1d2   :  { %v1639_v44 = vadd.f32 %v1572_v16, %v1476_v35  ;;  %v646_v50 = vpop.f32.mrb[7].mxu1  ;;  %v1202_v56 = vpop.f32.mrb[9].mxu0 }
 0x1d3   :  { %v1640_v60 = vadd.f32 %v1190_v28, %v646_v50 }
 0x1d4   :  { %1255 = vst [vmem:[%s2011_s2 + $0x38] sm:$0xff] %v1639_v44 }
 0x1d5   :  { %1254 = vst [vmem:[%s2011_s2 + $0x30] sm:$0xff] %v1640_v60  ;;  %v1479_v0 = vpop.f32.mrb[8].mxu1  ;;  %v1578_v2 = vpop.f32.mrb[10].mxu0 }
 0x1d6   :  { %v1641_v3 = vadd.f32 %v1575_v38, %v1479_v0  ;;  %v660_v4 = vpop.f32.mrb[9].mxu1  ;;  %v1214_v6 = vpop.f32.mrb[11].mxu0 }
 0x1d7   :  { %v1642_v7 = vadd.f32 %v1202_v56, %v660_v4 }
 0x1d8   :  { %1257 = vst [vmem:[%s2011_s2 + $0x48] sm:$0xff] %v1641_v3 }
 0x1d9   :  { %1256 = vst [vmem:[%s2011_s2 + $0x40] sm:$0xff] %v1642_v7  ;;  %v1482_v9 = vpop.f32.mrb[10].mxu1  ;;  %v1581_v10 = vpop.f32.mrb[12].mxu0 }
 0x1da   :  { %v1643_v11 = vadd.f32 %v1578_v2, %v1482_v9  ;;  %v674_v14 = vpop.f32.mrb[11].mxu1  ;;  %v1226_v15 = vpop.f32.mrb[13].mxu0 }
 0x1db   :  { %v1644_v17 = vadd.f32 %v1214_v6, %v674_v14 }
 0x1dc   :  { %1259 = vst [vmem:[%s2011_s2 + $0x58] sm:$0xff] %v1643_v11 }
 0x1dd   :  { %1258 = vst [vmem:[%s2011_s2 + $0x50] sm:$0xff] %v1644_v17  ;;  %v1485_v18 = vpop.f32.mrb[12].mxu1  ;;  %v1584_v20 = vpop.f32.mrb[14].mxu0 }
 0x1de   :  { %v1645_v22 = vadd.f32 %v1581_v10, %v1485_v18  ;;  %v688_v23 = vpop.f32.mrb[13].mxu1  ;;  %v1238_v25 = vpop.f32.mrb[15].mxu0 }
 0x1df   :  { %v1646_v26 = vadd.f32 %v1226_v15, %v688_v23 }
 0x1e0   :  { %1261 = vst [vmem:[%s2011_s2 + $0x68] sm:$0xff] %v1645_v22 }
 0x1e1   :  { %1260 = vst [vmem:[%s2011_s2 + $0x60] sm:$0xff] %v1646_v26  ;;  %v1488_v27 = vpop.f32.mrb[14].mxu1 }
 0x1e2   :  { %v1647_v29 = vadd.f32 %v1584_v20, %v1488_v27  ;;  %v702_v30 = vpop.f32.mrb[15].mxu1 }
 0x1e3   :  { %v1648_v32 = vadd.f32 %v1238_v25, %v702_v30 }
 0x1e4   :  { %1263 = vst [vmem:[%s2011_s2 + $0x78] sm:$0xff] %v1647_v29 }
 0x1e5   :  { %1262 = vst [vmem:[%s2011_s2 + $0x70] sm:$0xff] %v1648_v32 }

</bundles_post_ra>
